<compile_context>
chip_gen: v6e
topology: v6e:2x2x1
jax: 0.10.0
libtpu: 0.0.40
codegen_flags: <defaults>
</compile_context>

<pallas_src>
import jax
import jax.numpy as jnp
from jax.experimental import pallas as pl
from jax.experimental.pallas import tpu as pltpu

LANES = 128                       # TPU vreg lane width; last dim of every 2-D block.
_SUBLANE = {4: 8, 2: 16, 1: 32}   # native sublane tile per itemsize
_DEFAULT_BLOCK_BYTES = 4 << 20    # ~4 MiB per block (review: 2-4 MiB sweet spot)
_SPLIT_MIN_BYTES = 1 << 20        # only go multi-block when tensor > ~1 MiB
_MIN_PALLAS_ELEMS = 1 << 16       # below this, fused XLA elementwise is faster
_VMEM_LIMIT_BYTES = 32 << 20      # 16 MiB of block buffers + headroom, valid on v5e/v6e/v7x


def _round_up(x: int, m: int) -> int:
    return -(-x // m) * m


def _h_sigmoid_kernel(x_ref, o_ref):
    # y = clip(x + 3, 0, 6) / 6  == ReLU6(x + 3) / 6.
    # Weak-typed constants keep the computation in the input dtype, matching
    # PyTorch eager behaviour for bf16/f16 inputs.
    x = x_ref[...]
    y = jnp.minimum(jnp.maximum(x + 3.0, 0.0), 6.0) * (1.0 / 6.0)
    o_ref[...] = y.astype(o_ref.dtype)


def _pallas_2d(x2d, rows, itemsize, block_bytes, donate):
    """Lane-dense (rows, 128) slab; blocks are (tile_rows, 128)."""
    sub = _SUBLANE.get(itemsize, 8)
    bytes_per_row = LANES * itemsize

    if rows * bytes_per_row <= _SPLIT_MIN_BYTES or rows < 2 * sub:
        # Small tensor: a single block is best on 1-TC chips (v5e/v6e); the
        # megacore loss on v7x is negligible in absolute terms at this size.
        tile_rows = rows
    else:
        max_rows = max(sub, (block_bytes // bytes_per_row) // sub * sub)
        nsteps = max(2, pl.cdiv(rows, max_rows))
        if nsteps % 2:
            nsteps += 1              # even step count -> balanced across v7x's 2 TCs
        tile_rows = min(rows, _round_up(pl.cdiv(rows, nsteps), sub))

    grid = (pl.cdiv(rows, tile_rows),)
    return pl.pallas_call(
        _h_sigmoid_kernel,
        out_shape=jax.ShapeDtypeStruct((rows, LANES), x2d.dtype),
        grid=grid,
        in_specs=[pl.BlockSpec((tile_rows, LANES), lambda i: (i, 0))],
        out_specs=pl.BlockSpec((tile_rows, LANES), lambda i: (i, 0)),
        input_output_aliases=({0: 0} if donate else {}),
        compiler_params=pltpu.CompilerParams(
            dimension_semantics=("parallel",),
            vmem_limit_bytes=_VMEM_LIMIT_BYTES,
        ),
    )(x2d)


def _pallas_1d(x1d, n_elems, itemsize, block_bytes, donate):
    """Ragged sizes (n % 128 != 0): 1-D contiguous blocks, Pallas masks the
    final partial block, so no whole-tensor pad/slice round trips are needed."""
    sub = _SUBLANE.get(itemsize, 8)
    unit = sub * LANES               # whole native (sub, 128) tiles per block
    # Keep 1-D blocks a bit smaller (<=1 MiB) to bound per-step unrolled code.
    budget = max(unit, (min(block_bytes, 1 << 20) // itemsize) // unit * unit)

    nsteps = pl.cdiv(n_elems, budget)
    if nsteps > 1 and nsteps % 2:
        nsteps += 1                  # even step count for v7x TC balance
    blk = min(budget, _round_up(pl.cdiv(n_elems, nsteps), unit))
    blk = max(LANES, min(blk, _round_up(n_elems, LANES)))   # never (much) larger than data

    grid = (pl.cdiv(n_elems, blk),)
    return pl.pallas_call(
        _h_sigmoid_kernel,
        out_shape=jax.ShapeDtypeStruct((n_elems,), x1d.dtype),
        grid=grid,
        in_specs=[pl.BlockSpec((blk,), lambda i: (i,))],
        out_specs=pl.BlockSpec((blk,), lambda i: (i,)),
        input_output_aliases=({0: 0} if donate else {}),
        compiler_params=pltpu.CompilerParams(
            dimension_semantics=("parallel",),
            vmem_limit_bytes=_VMEM_LIMIT_BYTES,
        ),
    )(x1d)


def h_sigmoid(x: jax.Array, *,
              block_bytes: int = _DEFAULT_BLOCK_BYTES,
              min_pallas_elems: int = _MIN_PALLAS_ELEMS,
              donate: bool = False) -> jax.Array:
    """Elementwise hard-sigmoid matching PyTorch h_sigmoid.forward.

    donate=True aliases the (flattened) input buffer to the output
    (input_output_aliases={0: 0}); only use it when the caller gives up x.
    """
    n_elems = x.size
    if n_elems == 0:
        return x

    # Small-tensor fast path: pure dispatch + per-step overhead territory;
    # XLA's fused elementwise op is strictly faster and the kernel adds nothing.
    if n_elems < min_pallas_elems:
        return (jnp.clip(x + 3.0, 0.0, 6.0) * (1.0 / 6.0)).astype(x.dtype)

    itemsize = jnp.dtype(x.dtype).itemsize
    if n_elems % LANES == 0:
        rows = n_elems // LANES
        out = _pallas_2d(x.reshape(rows, LANES), rows, itemsize, block_bytes, donate)
    else:
        out = _pallas_1d(x.reshape(-1), n_elems, itemsize, block_bytes, donate)
    return out.reshape(x.shape)


if __name__ == "__main__":
    key = jax.random.PRNGKey(0)
    k1, k2, k3, k4 = jax.random.split(key, 4)

    def ref(v):
        return jnp.clip(v + 3.0, 0.0, 6.0) / 6.0

    # 1) Tiny NCHW activation (batch=2, channels=4, H=W=16) -> fast path.
    x1 = jax.random.normal(k1, (2, 4, 16, 16), dtype=jnp.float32) * 4.0
    y1 = jax.block_until_ready(h_sigmoid(x1))
    assert y1.shape == x1.shape and y1.dtype == x1.dtype
    assert jnp.max(jnp.abs(y1 - ref(x1))) < 1e-6

    # 2) Same tensor forced through the Pallas kernel (single aligned 2-D block).
    y2 = jax.block_until_ready(h_sigmoid(x1, min_pallas_elems=0))
    assert jnp.max(jnp.abs(y2 - ref(x1))) < 1e-6

    # 3) Larger aligned tensor (>1 MiB) -> balanced 2-block grid (both TCs on v7x).
    x3 = jax.random.normal(k2, (2, 4, 192, 192), dtype=jnp.float32) * 4.0
    y3 = jax.block_until_ready(h_sigmoid(x3, min_pallas_elems=0))
    assert jnp.max(jnp.abs(y3 - ref(x3))) < 1e-6

    # 4) Size not a multiple of 128 -> ragged 1-D path (no pad/slice copies),
    #    small block_bytes so the grid has a masked final block.
    x4 = jax.random.normal(k3, (2, 4, 31, 31), dtype=jnp.float32) * 4.0
    y4 = jax.block_until_ready(h_sigmoid(x4, min_pallas_elems=0, block_bytes=16 * 1024))
    assert y4.shape == x4.shape and y4.dtype == x4.dtype
    assert jnp.max(jnp.abs(y4 - ref(x4))) < 1e-6

    # 5) bf16 coverage (computation stays in bf16, like PyTorch eager on bf16).
    x5 = (jax.random.normal(k4, (2, 4, 32, 32), dtype=jnp.float32) * 4.0).astype(jnp.bfloat16)
    y5 = jax.block_until_ready(h_sigmoid(x5, min_pallas_elems=0))
    assert y5.dtype == jnp.bfloat16 and y5.shape == x5.shape
    assert jnp.max(jnp.abs(y5.astype(jnp.float32) - ref(x5.astype(jnp.float32)))) < 2e-2

    print("KERNEL_OK")
</pallas_src>

<mosaic_0001>
module attributes {stable_mosaic.version = 11 : i64} {
  func.func @_h_sigmoid_kernel(%arg0: i32, %arg1: memref<16x128xf32, #tpu.memory_space<vmem>>, %arg2: memref<16x128xf32, #tpu.memory_space<vmem>>) attributes {dimension_semantics = [#tpu.dimension_semantics<parallel>], iteration_bounds = array<i64: 1>, scalar_prefetch = 0 : i64, scratch_operands = 0 : i64, tpu.core_type = #tpu.core_type<tc>, window_params = [{transform_indices = @transform_0, window_bounds = array<i64: 16, 128>}, {transform_indices = @transform_1, window_bounds = array<i64: 16, 128>}]} {
    %c0 = arith.constant 0 : index
    %c0_0 = arith.constant 0 : index
    %0 = vector.load %arg1[%c0, %c0_0] : memref<16x128xf32, #tpu.memory_space<vmem>>, vector<16x128xf32>
    %cst = arith.constant 3.000000e+00 : f32
    %1 = vector.broadcast %cst : f32 to vector<16x128xf32>
    %2 = arith.addf %0, %1 : vector<16x128xf32>
    %cst_1 = arith.constant 0.000000e+00 : f32
    %3 = vector.broadcast %cst_1 : f32 to vector<16x128xf32>
    %4 = arith.maximumf %2, %3 : vector<16x128xf32>
    %cst_2 = arith.constant 6.000000e+00 : f32
    %5 = vector.broadcast %cst_2 : f32 to vector<16x128xf32>
    %6 = arith.minimumf %4, %5 : vector<16x128xf32>
    %cst_3 = arith.constant 0.166666672 : f32
    %7 = vector.broadcast %cst_3 : f32 to vector<16x128xf32>
    %8 = arith.mulf %6, %7 : vector<16x128xf32>
    %c0_4 = arith.constant 0 : index
    %c0_5 = arith.constant 0 : index
    %9 = vector.load %arg2[%c0_4, %c0_5] : memref<16x128xf32, #tpu.memory_space<vmem>>, vector<16x128xf32>
    tpu.vector_store %arg2[%c0_4, %c0_5], %8 {strides = array<i32>} : memref<16x128xf32, #tpu.memory_space<vmem>>, vector<16x128xf32>,
    return
  }
  func.func @transform_0(%arg0: i32) -> (i32, i32) {
    %c0_i32 = arith.constant 0 : i32
    %c0_i32_0 = arith.constant 0 : i32
    return %arg0, %c0_i32 : i32, i32
  }
  func.func @transform_1(%arg0: i32) -> (i32, i32) {
    %c0_i32 = arith.constant 0 : i32
    %c0_i32_0 = arith.constant 0 : i32
    return %arg0, %c0_i32 : i32, i32
  }
}

</mosaic_0001>

<bundles_post_ra>
// kernel: tpu_custom_call.1
= control target key start
LH: loop header
LB: loop body
LE: loop exit
PB: predicated region body
PF: predicated region fallthrough
CT: control target
= control target key end

     0   :  { %6 = vsyncpa [#allocation3], 0  ;;  %s126_s0 = inlined_call_operand.hbm [shape: f32[16,128], index: 0, kind: input, shape index: {}]   ;;  %s127_s1 = inlined_call_operand.hbm [shape: f32[16,128], index: 1, kind: output, shape index: {}]  }
   0x1   :  { %7 = vsyncpa [#allocation4], 0  ;;  %s100_s6 = smov [#allocation2]  }
   0x2   :  { %s13_s7 = sshll.u32 %s100_s6, 4  ;;  %s14_s7 = int_to_ptr.vmem [resolvable:$true] %s13_s7 }
   0x3   :  { %s64_s8 = scalar_lea.vmem %s14_s7, 256  ;;  %p69_p1 = scmp.lt.s32.totalorder %s14_s7, %s14_s7 }
   0x4   :  { %p65_p0 = scmp.ne.s32.totalorder %s14_s7, %s64_s8  ;;  %p70_p2 = scmp.lt.s32.totalorder %s64_s8, %s64_s8 }
   0x6   :  { %p71_p3 = por %p70_p2, %p69_p1 }
   0x8   :  { %p72_p4 = pnand %p71_p3, %p65_p0 }
   0xa   :  { %75 = shalt.err (!%p72_p4)
}
   0xb   :  { %s101_s9 = smov 128   ;;  %s102_s10 = smov 8  }
   0xc   :  { %19 = dma.hbm_to_vmem [thread:$0]  %s126_s0, 256, %s14_s7, [#allocation3], %s101_s9, %s101_s9, %s102_s10  }
   0xd   :  { %96 = dma.done.wait [#allocation3], 256  }
   0xe   :  { %97 = vsyncadd [#allocation3], 4294967040  ;;  %v23_v0 = vld [vmem:[#allocation2] sm:$0xff]  ;;  %v24_v1 = vld [vmem:[#allocation2 + $0x8] sm:$0xff]  ;;  %s103_s13 = smov [#allocation5]  }
   0xf   :  { %v25_v2 = vadd.f32 3.0, %v23_v0  ;;  %v26_v3 = vadd.f32 3.0, %v24_v1  ;;  %s40_s14 = sshll.u32 %s103_s13, 4  ;;  %s41_s14 = int_to_ptr.vmem [resolvable:$true] %s40_s14 }
  0x10   :  { %s76_s15 = scalar_lea.vmem %s41_s14, 256  ;;  %p81_p6 = scmp.lt.s32.totalorder %s41_s14, %s41_s14 }
  0x11   :  { %v27_v4 = vmax.f32 %v25_v2, 0.0  ;;  %v28_v5 = vmax.f32 %v26_v3, 0.0  ;;  %p77_p5 = scmp.ne.s32.totalorder %s41_s14, %s76_s15  ;;  %p82_p7 = scmp.lt.s32.totalorder %s76_s15, %s76_s15 }
  0x13   :  { %v29_v6 = vmin.f32 %v27_v4, 6.0  ;;  %v30_v7 = vmin.f32 %v28_v5, 6.0  ;;  %p83_p8 = por %p82_p7, %p81_p6 }
  0x15   :  { %v31_v8 = vmul.f32 0.16666667, %v29_v6  ;;  %v32_v9 = vmul.f32 0.16666667, %v30_v7  ;;  %p84_p9 = pnand %p83_p8, %p77_p5 }
  0x17   :  { %33 = vst [vmem:[#allocation5] sm:$0xff] %v31_v8  ;;  %34 = vst [vmem:[#allocation5 + $0x8] sm:$0xff] %v32_v9 }
  0x18   :  { %87 = shalt.err (!%p84_p9)
}
  0x19   :  { %46 = dma.vmem_to_hbm [thread:$0]  %s41_s14, 256, %s127_s1, [#allocation4], %s101_s9, %s101_s9, %s102_s10  }
  0x1a   :  { %98 = dma.done.wait [#allocation4], 256  }
  0x1b   :  { %99 = vsyncadd [#allocation4], 4294967040 }
  0x1c   :  { %50 = vsyncpa [#allocation3], 1 }
  0x1d   :  { %51 = vsyncpa [#allocation4], 1 }

</bundles_post_ra>
